<compile_context>
chip_gen: v5e
topology: v5e:2x2
jax: 0.10.0
libtpu: 0.0.40
codegen_flags: <defaults>
</compile_context>

<pallas_src>
import jax
import jax.numpy as jnp
from jax.experimental import pallas as pl
from jax.experimental.pallas import tpu as pltpu

_LANE_CHOICES = (2048, 1024, 512, 256, 128)
_FALLBACK_LANES = 512


def _h_swish_kernel(x_ref, o_ref):
    # h_sigmoid(x) = relu6(x + 3) / 6 ; h_swish(x) = x * h_sigmoid(x)
    # Upcast to f32 for the arithmetic (free: kernel is HBM-bound), cast back
    # to the I/O dtype at the store.
    x = x_ref[...].astype(jnp.float32)
    y = x * (jnp.clip(x + 3.0, 0.0, 6.0) * (1.0 / 6.0))
    o_ref[...] = y.astype(o_ref.dtype)


def _round_up(a: int, b: int) -> int:
    return ((a + b - 1) // b) * b


def _round_down(a: int, b: int) -> int:
    return (a // b) * b


def _target_block_bytes() -> int:
    """Per-buffer byte budget, generation aware (conservative default)."""
    try:
        kind = jax.devices()[0].device_kind.lower()
    except Exception:  # pragma: no cover - CPU/interpret fallback
        kind = ""
    if "v7" in kind or "7x" in kind:
        return 4 * 1024 * 1024   # v7x: amortize per-step overhead vs 3.2 TB/s HBM
    # v5e (16 MiB scoped default) and v6e: ~2 MiB/buffer -> <=8 MiB total
    return 2 * 1024 * 1024


def _pick_lanes(numel: int) -> int:
    for lanes in _LANE_CHOICES:
        if numel % lanes == 0:
            return lanes
    return _FALLBACK_LANES  # rare: requires a small pad to a lane multiple


def h_swish(x: jax.Array) -> jax.Array:
    """Elementwise hard-swish (any shape, e.g. NCHW) via a tiled Pallas TPU kernel."""
    orig_shape = x.shape
    dtype = x.dtype
    itemsize = jnp.dtype(dtype).itemsize
    numel = x.size

    lanes = _pick_lanes(numel)
    flat = x.reshape(-1)

    padded_numel = _round_up(numel, lanes)
    needs_pad = padded_numel != numel
    if needs_pad:
        # Fallback only (numel not a multiple of 128): pad to one lane multiple.
        flat = jnp.pad(flat, (0, padded_numel - numel))  # h_swish(0) == 0

    rows = padded_numel // lanes
    x2d = flat.reshape(rows, lanes)

    # Dtype-native sublane packing: 8 (f32), 16 (bf16/f16), 32 (int8/fp8).
    sublane = max(8, 32 // itemsize)

    # Block rows from the per-buffer byte budget.
    target_rows = max(1, _target_block_bytes() // (lanes * itemsize))
    if rows <= target_rows:
        # Single block covering the full row extent (allowed even if not a
        # sublane multiple because the block equals the full array dim).
        block_rows = rows
    else:
        block_rows = max(sublane, _round_down(target_rows, sublane))

    grid = (pl.cdiv(rows, block_rows),)
    block_bytes = block_rows * lanes * itemsize
    # in + out, double-buffered, plus headroom; capped well under physical VMEM.
    vmem_limit = min(128 * 1024 * 1024, max(4 * block_bytes + (4 << 20), 16 << 20))

    out2d = pl.pallas_call(
        _h_swish_kernel,
        out_shape=jax.ShapeDtypeStruct((rows, lanes), dtype),
        grid_spec=pl.GridSpec(
            grid=grid,
            in_specs=[pl.BlockSpec((block_rows, lanes), lambda i: (i, 0))],
            out_specs=pl.BlockSpec((block_rows, lanes), lambda i: (i, 0)),
        ),
        compiler_params=pltpu.CompilerParams(
            # Single independent axis -> shardable across v7x's two TensorCores.
            dimension_semantics=("parallel",),
            vmem_limit_bytes=int(vmem_limit),
        ),
    )(x2d)

    out_flat = out2d.reshape(-1)
    if needs_pad:
        out_flat = out_flat[:numel]
    return out_flat.reshape(orig_shape)


def h_swish_ref(x: jax.Array) -> jax.Array:
    xf = x.astype(jnp.float32)
    return (xf * (jnp.clip(xf + 3.0, 0.0, 6.0) / 6.0)).astype(x.dtype)


if __name__ == "__main__":
    key = jax.random.PRNGKey(0)

    # f32 check (matches the PyTorch module's default dtype). numel = 2048
    # -> lanes = 2048, zero-copy, single full-extent block.
    x = jax.random.normal(key, (2, 4, 16, 16), dtype=jnp.float32) * 4.0
    out = jax.block_until_ready(h_swish(x))
    ref = h_swish_ref(x)
    assert out.shape == x.shape and out.dtype == x.dtype
    assert jnp.allclose(out, ref, atol=1e-6, rtol=1e-6), "f32 mismatch vs reference"

    # bf16 check (bf16 on the wire, f32 arithmetic inside the kernel).
    xb = x.astype(jnp.bfloat16)
    outb = jax.block_until_ready(h_swish(xb))
    refb = h_swish_ref(xb)
    assert outb.shape == xb.shape and outb.dtype == xb.dtype
    assert jnp.allclose(outb.astype(jnp.float32), refb.astype(jnp.float32),
                        atol=5e-2, rtol=5e-2), "bf16 mismatch vs reference"

    # Larger, misaligned-row shape to exercise the partial final block path
    # (numel = 2*8*56*56*4B, divisible by 512 but rows not divisible by block_rows).
    x2 = jax.random.normal(jax.random.PRNGKey(1), (2, 8, 56, 56), dtype=jnp.float32) * 4.0
    out2 = jax.block_until_ready(h_swish(x2))
    assert jnp.allclose(out2, h_swish_ref(x2), atol=1e-6, rtol=1e-6), "partial-block mismatch"

    print("KERNEL_OK")
</pallas_src>

<mosaic_0001>
module attributes {stable_mosaic.version = 11 : i64} {
  func.func @_h_swish_kernel(%arg0: i32, %arg1: memref<1x2048xf32, #tpu.memory_space<vmem>>, %arg2: memref<1x2048xf32, #tpu.memory_space<vmem>>) attributes {dimension_semantics = [#tpu.dimension_semantics<parallel>], iteration_bounds = array<i64: 1>, scalar_prefetch = 0 : i64, scratch_operands = 0 : i64, tpu.core_type = #tpu.core_type<tc>, window_params = [{transform_indices = @transform_0, window_bounds = array<i64: 1, 2048>}, {transform_indices = @transform_1, window_bounds = array<i64: 1, 2048>}]} {
    %c0 = arith.constant 0 : index
    %c0_0 = arith.constant 0 : index
    %0 = vector.load %arg1[%c0, %c0_0] : memref<1x2048xf32, #tpu.memory_space<vmem>>, vector<1x2048xf32>
    %cst = arith.constant 3.000000e+00 : f32
    %1 = vector.broadcast %cst : f32 to vector<1x2048xf32>
    %2 = arith.addf %0, %1 : vector<1x2048xf32>
    %cst_1 = arith.constant 0.000000e+00 : f32
    %cst_2 = arith.constant 6.000000e+00 : f32
    %3 = vector.broadcast %cst_1 : f32 to vector<1x2048xf32>
    %4 = arith.maximumf %3, %2 : vector<1x2048xf32>
    %5 = vector.broadcast %cst_2 : f32 to vector<1x2048xf32>
    %6 = arith.minimumf %5, %4 : vector<1x2048xf32>
    %cst_3 = arith.constant 0.166666672 : f32
    %7 = vector.broadcast %cst_3 : f32 to vector<1x2048xf32>
    %8 = arith.mulf %6, %7 : vector<1x2048xf32>
    %9 = arith.mulf %0, %8 : vector<1x2048xf32>
    %c0_4 = arith.constant 0 : index
    %c0_5 = arith.constant 0 : index
    %10 = vector.load %arg2[%c0_4, %c0_5] : memref<1x2048xf32, #tpu.memory_space<vmem>>, vector<1x2048xf32>
    tpu.vector_store %arg2[%c0_4, %c0_5], %9 {strides = array<i32>} : memref<1x2048xf32, #tpu.memory_space<vmem>>, vector<1x2048xf32>,
    return
  }
  func.func @transform_0(%arg0: i32) -> (i32, i32) {
    %c0_i32 = arith.constant 0 : i32
    %c0_i32_0 = arith.constant 0 : i32
    return %arg0, %c0_i32 : i32, i32
  }
  func.func @transform_1(%arg0: i32) -> (i32, i32) {
    %c0_i32 = arith.constant 0 : i32
    %c0_i32_0 = arith.constant 0 : i32
    return %arg0, %c0_i32 : i32, i32
  }
}

</mosaic_0001>

<bundles_post_ra>
// kernel: tpu_custom_call.1
= control target key start
LH: loop header
LB: loop body
LE: loop exit
PB: predicated region body
PF: predicated region fallthrough
CT: control target
= control target key end

     0   :  { %6 = vsyncpa [#allocation3], 0  ;;  %s126_s0 = inlined_call_operand.hbm [shape: f32[1,2048], index: 0, kind: input, shape index: {}]   ;;  %s127_s1 = inlined_call_operand.hbm [shape: f32[1,2048], index: 1, kind: output, shape index: {}]  }
   0x1   :  { %7 = vsyncpa [#allocation4], 0  ;;  %s13_s8 = sshll.u32 %s126_s0, 4  ;;  %s108_s9 = smov [#allocation2]   ;;  %s14_s8 = int_to_ptr.hbm [resolvable:$true] %s13_s8 }
   0x2   :  { %s15_s10 = sshll.u32 %s108_s9, 4  ;;  %s16_s10 = int_to_ptr.vmem [resolvable:$true] %s15_s10 }
   0x3   :  { %18 = dma.hbm_to_vmem [thread:$0]  %s14_s8, 256, %s16_s10, [#allocation3]  }
   0x4   :  { %104 = dma.done.wait [#allocation3], 256  }
   0x5   :  { %105 = vsyncadd [#allocation3], 4294967040  ;;  %v23_v0 = vld [vmem:[#allocation2] sm:$0xff]  ;;  %v24_v1 = vld [vmem:[#allocation2 + $0x8] sm:$0xff]  ;;  %s109_s11 = smov [#allocation5]   ;;  %s44_s14 = sshll.u32 %s127_s1, 4  ;;  %s45_s14 = int_to_ptr.hbm [resolvable:$true] %s44_s14 }
   0x6   :  { %v25_v2 = vadd.f32 3.0, %v23_v0  ;;  %v26_v3 = vadd.f32 3.0, %v24_v1  ;;  %s42_s12 = sshll.u32 %s109_s11, 4  ;;  %s43_s12 = int_to_ptr.vmem [resolvable:$true] %s42_s12 }
   0x8   :  { %v27_v4 = vmax.f32 %v25_v2, 0.0  ;;  %v28_v5 = vmax.f32 %v26_v3, 0.0 }
   0xa   :  { %v29_v6 = vmin.f32 %v27_v4, 6.0  ;;  %v30_v7 = vmin.f32 %v28_v5, 6.0 }
   0xc   :  { %v31_v8 = vmul.f32 0.16666667, %v29_v6  ;;  %v32_v9 = vmul.f32 0.16666667, %v30_v7 }
   0xe   :  { %v33_v10 = vmul.f32 %v31_v8, %v23_v0  ;;  %v34_v11 = vmul.f32 %v32_v9, %v24_v1 }
  0x10   :  { %35 = vst [vmem:[#allocation5] sm:$0xff] %v33_v10 }
  0x11   :  { %36 = vst [vmem:[#allocation5 + $0x8] sm:$0xff] %v34_v11 }
  0x12   :  { %47 = dma.vmem_to_hbm [thread:$0]  %s43_s12, 256, %s45_s14, [#allocation4]  }
  0x13   :  { %106 = dma.done.wait [#allocation4], 256  }
  0x14   :  { %107 = vsyncadd [#allocation4], 4294967040 }
  0x15   :  { %52 = vsyncpa [#allocation3], 1 }
  0x16   :  { %53 = vsyncpa [#allocation4], 1 }

</bundles_post_ra>
